<compile_context>
chip_gen: v5e
topology: v5e:2x2
jax: 0.10.0
libtpu: 0.0.40
codegen_flags: <defaults>
</compile_context>

<pallas_src>
import jax
import jax.numpy as jnp
from jax.experimental import pallas as pl
from jax.experimental.pallas import tpu as pltpu


def mlp5_kernel(x_ref,
                w1_ref, b1_ref,
                w2_ref, b2_ref,
                w3_ref, b3_ref,
                w4_ref, b4_ref,
                w5t_ref, b5_ref,
                out_ref):
    """Fused feature-major forward pass for one batch tile.

    x_ref:   (D_in, tile_n)        -- batch on the lane axis
    w1_ref:  (H, D_in), b1..b4: (H, 1), w2..w4: (H, H)
    w5t_ref: (H, n_out), b5: (n_out, 1)
    out_ref: (n_out, tile_n)
    """
    x = x_ref[...]                       # (D_in, tile_n)
    d_in = x_ref.shape[0]

    # ---- Layer 1 on the VPU: K = D_in (= 2) is tiny; an MXU matmul would pad
    # K to the full systolic depth for essentially no math.  Trace-time unroll
    # over D_in with broadcast multiply-adds instead.
    h = b1_ref[...]                      # (H, 1) -> broadcasts over lanes
    for k in range(d_in):
        h = h + w1_ref[:, k:k + 1] * x[k:k + 1, :]   # (H,1)*(1,tile_n)
    h = jnp.tanh(h)                      # (H, tile_n)

    # ---- Hidden layers on the MXU; batch stays on the 128-lane axis.
    h = jnp.tanh(jnp.dot(w2_ref[...], h, preferred_element_type=jnp.float32)
                 + b2_ref[...])
    h = jnp.tanh(jnp.dot(w3_ref[...], h, preferred_element_type=jnp.float32)
                 + b3_ref[...])
    h = jnp.tanh(jnp.dot(w4_ref[...], h, preferred_element_type=jnp.float32)
                 + b4_ref[...])

    # ---- Layer 5: the module applies Tanh to the final Linear as well.
    if out_ref.shape[0] == 1:
        # n_out == 1: VPU multiply + cross-sublane (XLU) reduce, no M=1 MXU op.
        pre = jnp.sum(w5t_ref[...] * h, axis=0, keepdims=True) + b5_ref[...]
    else:
        # General n_out: contract over the feature (sublane) axis.
        pre = jax.lax.dot_general(w5t_ref[...], h, (((0,), (0,)), ((), ())),
                                  preferred_element_type=jnp.float32) + b5_ref[...]
    out_ref[...] = jnp.tanh(pre).astype(out_ref.dtype)


def mlp5_forward(x, params, *, tile_n=128):
    """x: (N, D_in) float32.  params: [(W, b)] with W (out, in), b (out,)."""
    N, d_in = x.shape
    (w1, b1), (w2, b2), (w3, b3), (w4, b4), (w5, b5) = params
    H = w1.shape[0]
    n_out = w5.shape[0]

    # Pad the batch to a multiple of tile_n (keeps the lane axis a clean
    # multiple of 128); padded rows are computed and discarded.
    n_pad = (-N) % tile_n
    if n_pad:
        x = jnp.concatenate([x, jnp.zeros((n_pad, d_in), x.dtype)], axis=0)
    Np = N + n_pad

    # Feature-major: batch on the lane (last) axis everywhere.
    xt = x.T.astype(jnp.float32)          # (D_in, Np)
    b1c, b2c, b3c, b4c = (b.reshape(H, 1) for b in (b1, b2, b3, b4))
    w5t = w5.T                            # (H, n_out)
    b5c = b5.reshape(n_out, 1)

    def const_spec(shape):
        # Full (un-tiled) block, same index every grid step -> loaded once,
        # stays resident in VMEM for all batch tiles.
        return pl.BlockSpec(shape, lambda i: (0, 0))

    grid_spec = pltpu.PrefetchScalarGridSpec(
        num_scalar_prefetch=0,
        grid=(Np // tile_n,),
        in_specs=[
            pl.BlockSpec((d_in, tile_n), lambda i: (0, i)),
            const_spec(w1.shape), const_spec((H, 1)),
            const_spec(w2.shape), const_spec((H, 1)),
            const_spec(w3.shape), const_spec((H, 1)),
            const_spec(w4.shape), const_spec((H, 1)),
            const_spec((H, n_out)), const_spec((n_out, 1)),
        ],
        out_specs=pl.BlockSpec((n_out, tile_n), lambda i: (0, i)),
    )

    out_t = pl.pallas_call(
        mlp5_kernel,
        out_shape=jax.ShapeDtypeStruct((n_out, Np), jnp.float32),
        grid_spec=grid_spec,
        compiler_params=pltpu.CompilerParams(
            dimension_semantics=("parallel",)),   # batch tiles shard across TCs on v7x
    )(xt, w1, b1c, w2, b2c, w3, b3c, w4, b4c, w5t, b5c)

    return out_t.T[:N]                    # (N, n_out)


def init_params(key, n_input, n_hidden, n_output):
    """PyTorch-layout init mimicking nn.Linear default (U(-1/sqrt(fan_in), +))."""
    dims = [(n_hidden, n_input), (n_hidden, n_hidden), (n_hidden, n_hidden),
            (n_hidden, n_hidden), (n_output, n_hidden)]
    params = []
    for (fan_out, fan_in) in dims:
        key, kw, kb = jax.random.split(key, 3)
        bound = 1.0 / jnp.sqrt(jnp.float32(fan_in))
        w = jax.random.uniform(kw, (fan_out, fan_in), jnp.float32, -bound, bound)
        b = jax.random.uniform(kb, (fan_out,), jnp.float32, -bound, bound)
        params.append((w, b))
    return params


def reference_forward(x, params):
    h = x
    for (w, b) in params:
        h = jnp.tanh(h @ w.T + b)         # tanh after every layer, incl. the last
    return h


if __name__ == "__main__":
    # Small shapes consistent with the module: D_in=2, hidden=32, n_output=1.
    D_in, H, D_out = 2, 32, 1

    key = jax.random.PRNGKey(0)
    kx1, kx2, kp = jax.random.split(key, 3)
    params = init_params(kp, D_in, H, D_out)

    # Case 1: N a multiple of tile_n (256 -> 2 grid steps, both v7x TCs busy).
    N1 = 256
    x1 = jax.random.uniform(kx1, (N1, D_in), jnp.float32, -1.0, 1.0)
    out1 = jax.block_until_ready(mlp5_forward(x1, params, tile_n=128))
    ref1 = reference_forward(x1, params)
    assert out1.shape == (N1, D_out)
    assert jnp.allclose(out1, ref1, atol=1e-5, rtol=1e-5), "mismatch (N=256)"

    # Case 2: N not a multiple of tile_n (exercises the padding path, like the
    # module's N=2000).
    N2 = 200
    x2 = jax.random.uniform(kx2, (N2, D_in), jnp.float32, -1.0, 1.0)
    out2 = jax.block_until_ready(mlp5_forward(x2, params, tile_n=128))
    ref2 = reference_forward(x2, params)
    assert out2.shape == (N2, D_out)
    assert jnp.allclose(out2, ref2, atol=1e-5, rtol=1e-5), "mismatch (N=200)"

    print("KERNEL_OK")
</pallas_src>

<mosaic_0001>
module attributes {stable_mosaic.version = 11 : i64} {
  func.func @mlp5_kernel(%arg0: i32, %arg1: memref<2x128xf32, #tpu.memory_space<vmem>>, %arg2: memref<32x2xf32, #tpu.memory_space<vmem>>, %arg3: memref<32x1xf32, #tpu.memory_space<vmem>>, %arg4: memref<32x32xf32, #tpu.memory_space<vmem>>, %arg5: memref<32x1xf32, #tpu.memory_space<vmem>>, %arg6: memref<32x32xf32, #tpu.memory_space<vmem>>, %arg7: memref<32x1xf32, #tpu.memory_space<vmem>>, %arg8: memref<32x32xf32, #tpu.memory_space<vmem>>, %arg9: memref<32x1xf32, #tpu.memory_space<vmem>>, %arg10: memref<32x1xf32, #tpu.memory_space<vmem>>, %arg11: memref<1x1xf32, #tpu.memory_space<vmem>>, %arg12: memref<1x128xf32, #tpu.memory_space<vmem>>) attributes {dimension_semantics = [#tpu.dimension_semantics<parallel>], iteration_bounds = array<i64: 2>, scalar_prefetch = 0 : i64, scratch_operands = 0 : i64, tpu.core_type = #tpu.core_type<tc>, window_params = [{transform_indices = @transform_0, window_bounds = array<i64: 2, 128>}, {pipeline_mode = #tpu.pipeline_mode<synchronous>, transform_indices = @transform_1, window_bounds = array<i64: 32, 2>}, {pipeline_mode = #tpu.pipeline_mode<synchronous>, transform_indices = @transform_2, window_bounds = array<i64: 32, 1>}, {pipeline_mode = #tpu.pipeline_mode<synchronous>, transform_indices = @transform_3, window_bounds = array<i64: 32, 32>}, {pipeline_mode = #tpu.pipeline_mode<synchronous>, transform_indices = @transform_4, window_bounds = array<i64: 32, 1>}, {pipeline_mode = #tpu.pipeline_mode<synchronous>, transform_indices = @transform_5, window_bounds = array<i64: 32, 32>}, {pipeline_mode = #tpu.pipeline_mode<synchronous>, transform_indices = @transform_6, window_bounds = array<i64: 32, 1>}, {pipeline_mode = #tpu.pipeline_mode<synchronous>, transform_indices = @transform_7, window_bounds = array<i64: 32, 32>}, {pipeline_mode = #tpu.pipeline_mode<synchronous>, transform_indices = @transform_8, window_bounds = array<i64: 32, 1>}, {pipeline_mode = #tpu.pipeline_mode<synchronous>, transform_indices = @transform_9, window_bounds = array<i64: 32, 1>}, {pipeline_mode = #tpu.pipeline_mode<synchronous>, transform_indices = @transform_10, window_bounds = array<i64: 1, 1>}, {transform_indices = @transform_11, window_bounds = array<i64: 1, 128>}]} {
    %c0 = arith.constant 0 : index
    %c0_0 = arith.constant 0 : index
    %0 = vector.load %arg1[%c0, %c0_0] : memref<2x128xf32, #tpu.memory_space<vmem>>, vector<2x128xf32>
    %c0_1 = arith.constant 0 : index
    %c0_2 = arith.constant 0 : index
    %1 = vector.load %arg3[%c0_1, %c0_2] : memref<32x1xf32, #tpu.memory_space<vmem>>, vector<32x1xf32>
    %c0_3 = arith.constant 0 : index
    %c0_4 = arith.constant 0 : index
    %2 = vector.load %arg2[%c0_3, %c0_4] : memref<32x2xf32, #tpu.memory_space<vmem>>, vector<32x1xf32>
    %3 = vector.extract_strided_slice %0 {offsets = [0, 0], sizes = [1, 128], strides = [1, 1]} : vector<2x128xf32> to vector<1x128xf32>
    %4 = vector.broadcast %2 : vector<32x1xf32> to vector<32x128xf32>
    %5 = vector.broadcast %3 : vector<1x128xf32> to vector<32x128xf32>
    %6 = arith.mulf %4, %5 : vector<32x128xf32>
    %7 = vector.broadcast %1 : vector<32x1xf32> to vector<32x128xf32>
    %8 = arith.addf %7, %6 : vector<32x128xf32>
    %c0_5 = arith.constant 0 : index
    %c1 = arith.constant 1 : index
    %9 = vector.load %arg2[%c0_5, %c1] : memref<32x2xf32, #tpu.memory_space<vmem>>, vector<32x1xf32>
    %10 = vector.extract_strided_slice %0 {offsets = [1, 0], sizes = [1, 128], strides = [1, 1]} : vector<2x128xf32> to vector<1x128xf32>
    %11 = vector.broadcast %9 : vector<32x1xf32> to vector<32x128xf32>
    %12 = vector.broadcast %10 : vector<1x128xf32> to vector<32x128xf32>
    %13 = arith.mulf %11, %12 : vector<32x128xf32>
    %14 = arith.addf %8, %13 : vector<32x128xf32>
    %15 = math.tanh %14 : vector<32x128xf32>
    %c0_6 = arith.constant 0 : index
    %c0_7 = arith.constant 0 : index
    %16 = vector.load %arg4[%c0_6, %c0_7] : memref<32x32xf32, #tpu.memory_space<vmem>>, vector<32x32xf32>
    %cst = arith.constant dense<0.000000e+00> : vector<32x128xf32>
    %17 = tpu.matmul %16, %15, %cst {dimension_numbers = #tpu.dot_dimension_numbers<[1], [0], [0], [1], [0, 0, 1, 1], [], []>} : vector<32x32xf32>, vector<32x128xf32>, vector<32x128xf32> -> vector<32x128xf32>
    %c0_8 = arith.constant 0 : index
    %c0_9 = arith.constant 0 : index
    %18 = vector.load %arg5[%c0_8, %c0_9] : memref<32x1xf32, #tpu.memory_space<vmem>>, vector<32x1xf32>
    %19 = vector.broadcast %18 : vector<32x1xf32> to vector<32x128xf32>
    %20 = arith.addf %17, %19 : vector<32x128xf32>
    %21 = math.tanh %20 : vector<32x128xf32>
    %c0_10 = arith.constant 0 : index
    %c0_11 = arith.constant 0 : index
    %22 = vector.load %arg6[%c0_10, %c0_11] : memref<32x32xf32, #tpu.memory_space<vmem>>, vector<32x32xf32>
    %cst_12 = arith.constant dense<0.000000e+00> : vector<32x128xf32>
    %23 = tpu.matmul %22, %21, %cst_12 {dimension_numbers = #tpu.dot_dimension_numbers<[1], [0], [0], [1], [0, 0, 1, 1], [], []>} : vector<32x32xf32>, vector<32x128xf32>, vector<32x128xf32> -> vector<32x128xf32>
    %c0_13 = arith.constant 0 : index
    %c0_14 = arith.constant 0 : index
    %24 = vector.load %arg7[%c0_13, %c0_14] : memref<32x1xf32, #tpu.memory_space<vmem>>, vector<32x1xf32>
    %25 = vector.broadcast %24 : vector<32x1xf32> to vector<32x128xf32>
    %26 = arith.addf %23, %25 : vector<32x128xf32>
    %27 = math.tanh %26 : vector<32x128xf32>
    %c0_15 = arith.constant 0 : index
    %c0_16 = arith.constant 0 : index
    %28 = vector.load %arg8[%c0_15, %c0_16] : memref<32x32xf32, #tpu.memory_space<vmem>>, vector<32x32xf32>
    %cst_17 = arith.constant dense<0.000000e+00> : vector<32x128xf32>
    %29 = tpu.matmul %28, %27, %cst_17 {dimension_numbers = #tpu.dot_dimension_numbers<[1], [0], [0], [1], [0, 0, 1, 1], [], []>} : vector<32x32xf32>, vector<32x128xf32>, vector<32x128xf32> -> vector<32x128xf32>
    %c0_18 = arith.constant 0 : index
    %c0_19 = arith.constant 0 : index
    %30 = vector.load %arg9[%c0_18, %c0_19] : memref<32x1xf32, #tpu.memory_space<vmem>>, vector<32x1xf32>
    %31 = vector.broadcast %30 : vector<32x1xf32> to vector<32x128xf32>
    %32 = arith.addf %29, %31 : vector<32x128xf32>
    %33 = math.tanh %32 : vector<32x128xf32>
    %c0_20 = arith.constant 0 : index
    %c0_21 = arith.constant 0 : index
    %34 = vector.load %arg10[%c0_20, %c0_21] : memref<32x1xf32, #tpu.memory_space<vmem>>, vector<32x1xf32>
    %35 = vector.broadcast %34 : vector<32x1xf32> to vector<32x128xf32>
    %36 = arith.mulf %35, %33 : vector<32x128xf32>
    %cst_22 = arith.constant dense<0.000000e+00> : vector<128xf32>
    %37 = vector.multi_reduction <add>, %36, %cst_22 [0] : vector<32x128xf32> to vector<128xf32>
    %38 = vector.shape_cast %37 : vector<128xf32> to vector<1x128xf32>
    %c0_23 = arith.constant 0 : index
    %c0_24 = arith.constant 0 : index
    %39 = vector.load %arg11[%c0_23, %c0_24] : memref<1x1xf32, #tpu.memory_space<vmem>>, vector<1x1xf32>
    %40 = vector.broadcast %39 : vector<1x1xf32> to vector<1x128xf32>
    %41 = arith.addf %38, %40 : vector<1x128xf32>
    %42 = math.tanh %41 : vector<1x128xf32>
    %c0_25 = arith.constant 0 : index
    %c0_26 = arith.constant 0 : index
    %43 = vector.load %arg12[%c0_25, %c0_26] : memref<1x128xf32, #tpu.memory_space<vmem>>, vector<1x128xf32>
    tpu.vector_store %arg12[%c0_25, %c0_26], %42 {strides = array<i32>} : memref<1x128xf32, #tpu.memory_space<vmem>>, vector<1x128xf32>,
    return
  }
  func.func @transform_0(%arg0: i32) -> (i32, i32) {
    %c0_i32 = arith.constant 0 : i32
    %c0_i32_0 = arith.constant 0 : i32
    return %c0_i32, %arg0 : i32, i32
  }
  func.func @transform_1(%arg0: i32) -> (i32, i32) {
    %c0_i32 = arith.constant 0 : i32
    %c0_i32_0 = arith.constant 0 : i32
    %c0_i32_1 = arith.constant 0 : i32
    return %c0_i32, %c0_i32_0 : i32, i32
  }
  func.func @transform_2(%arg0: i32) -> (i32, i32) {
    %c0_i32 = arith.constant 0 : i32
    %c0_i32_0 = arith.constant 0 : i32
    %c0_i32_1 = arith.constant 0 : i32
    return %c0_i32, %c0_i32_0 : i32, i32
  }
  func.func @transform_3(%arg0: i32) -> (i32, i32) {
    %c0_i32 = arith.constant 0 : i32
    %c0_i32_0 = arith.constant 0 : i32
    %c0_i32_1 = arith.constant 0 : i32
    return %c0_i32, %c0_i32_0 : i32, i32
  }
  func.func @transform_4(%arg0: i32) -> (i32, i32) {
    %c0_i32 = arith.constant 0 : i32
    %c0_i32_0 = arith.constant 0 : i32
    %c0_i32_1 = arith.constant 0 : i32
    return %c0_i32, %c0_i32_0 : i32, i32
  }
  func.func @transform_5(%arg0: i32) -> (i32, i32) {
    %c0_i32 = arith.constant 0 : i32
    %c0_i32_0 = arith.constant 0 : i32
    %c0_i32_1 = arith.constant 0 : i32
    return %c0_i32, %c0_i32_0 : i32, i32
  }
  func.func @transform_6(%arg0: i32) -> (i32, i32) {
    %c0_i32 = arith.constant 0 : i32
    %c0_i32_0 = arith.constant 0 : i32
    %c0_i32_1 = arith.constant 0 : i32
    return %c0_i32, %c0_i32_0 : i32, i32
  }
  func.func @transform_7(%arg0: i32) -> (i32, i32) {
    %c0_i32 = arith.constant 0 : i32
    %c0_i32_0 = arith.constant 0 : i32
    %c0_i32_1 = arith.constant 0 : i32
    return %c0_i32, %c0_i32_0 : i32, i32
  }
  func.func @transform_8(%arg0: i32) -> (i32, i32) {
    %c0_i32 = arith.constant 0 : i32
    %c0_i32_0 = arith.constant 0 : i32
    %c0_i32_1 = arith.constant 0 : i32
    return %c0_i32, %c0_i32_0 : i32, i32
  }
  func.func @transform_9(%arg0: i32) -> (i32, i32) {
    %c0_i32 = arith.constant 0 : i32
    %c0_i32_0 = arith.constant 0 : i32
    %c0_i32_1 = arith.constant 0 : i32
    return %c0_i32, %c0_i32_0 : i32, i32
  }
  func.func @transform_10(%arg0: i32) -> (i32, i32) {
    %c0_i32 = arith.constant 0 : i32
    %c0_i32_0 = arith.constant 0 : i32
    %c0_i32_1 = arith.constant 0 : i32
    return %c0_i32, %c0_i32_0 : i32, i32
  }
  func.func @transform_11(%arg0: i32) -> (i32, i32) {
    %c0_i32 = arith.constant 0 : i32
    %c0_i32_0 = arith.constant 0 : i32
    return %c0_i32, %arg0 : i32, i32
  }
}

</mosaic_0001>

<bundles_post_ra>
// kernel: tpu_custom_call.1
= control target key start
LH: loop header
LB: loop body
LE: loop exit
PB: predicated region body
PF: predicated region fallthrough
CT: control target
= control target key end

     0   :  { %s1254_s0 = inlined_call_operand.vmem [shape: f32[2,256], index: 0, kind: input, shape index: {}]   ;;  %s1255_s1 = inlined_call_operand.vmem [shape: f32[32,2], index: 1, kind: input, shape index: {}]   ;;  %s1256_s2 = inlined_call_operand.vmem [shape: f32[32,1], index: 2, kind: input, shape index: {}]   ;;  %s1257_s3 = inlined_call_operand.vmem [shape: f32[32,32], index: 3, kind: input, shape index: {}]   ;;  %s1258_s4 = inlined_call_operand.vmem [shape: f32[32,1], index: 4, kind: input, shape index: {}]   ;;  %s1259_s5 = inlined_call_operand.vmem [shape: f32[32,32], index: 5, kind: input, shape index: {}]   ;;  %s1260_s6 = inlined_call_operand.vmem [shape: f32[32,1], index: 6, kind: input, shape index: {}]   ;;  %s1261_s7 = inlined_call_operand.vmem [shape: f32[32,32], index: 7, kind: input, shape index: {}]   ;;  %s1262_s8 = inlined_call_operand.vmem [shape: f32[32,1], index: 8, kind: input, shape index: {}]   ;;  %s1263_s9 = inlined_call_operand.vmem [shape: f32[32,1], index: 9, kind: input, shape index: {}]   ;;  %s1264_s10 = inlined_call_operand.<no memory space> [shape: f32[1,1], index: 10, kind: input, shape index: {}]   ;;  %s1265_s11 = inlined_call_operand.hbm [shape: f32[1,256], index: 11, kind: output, shape index: {}]  }
   0x1   :  { %1266 = sst [smem:[#allocation6_spill]] %s1254_s0  ;;  %v16_v0 = vstv %s1264_s10 }
   0x2   :  { %17 = vst [vmem:[#allocation2] sm:$0x1] %v16_v0 }
   0x3   :  { %18 = vsyncpa [#allocation4], 0 }
   0x4   :  { %20 = vsyncpa [#allocation4 + $0x1], 0  ;;  %s1049_s19 = smov 0   ;;  %s1051_s20 = smov 0  }
   0x5   :  { %s1053_s21 = smov 0   ;;  %s1055_s22 = smov 0  }
   0x6 LB: > { %s1070_s10 = sadd.s32 4294967295, %s982_s22   ;;  %s805_s23 = sadd.s32 4294967294, %s982_s22   ;;  %s982_s22 = sphi %s1055_s22, %s1273_s22   ;;  %s978_s21 = sphi %s1053_s21, %s1272_s21   ;;  %s974_s20 = sphi %s1051_s20, %s1271_s20   ;;  %s970_s19 = sphi %s1049_s19, %s1270_s19  }
   0x7   : > { %s1074_s24 = sadd.s32 1, %s982_s22   ;;  %s269_s25 = sadd.s32 1, %s978_s21 }
   0x8   : > { %s266_s26 = ssub.s32 %s982_s22, %s1074_s24  ;;  %p279_p0 = scmp.ne.s32.totalorder %s978_s21, %s974_s20 }
   0x9   : > { %p267_p1 = scmp.eq.s32.totalorder %s266_s26, 0  ;;  %p280_p2 = scmp.eq.s32.totalorder %s1070_s10, 1 }
   0xa   : > { %p285_p3 = scmp.ne.s32.totalorder %s974_s20, %s970_s19  ;;  %p286_p4 = scmp.eq.s32.totalorder %s805_s23, 1 }
   0xb   : > { %s1085_s27 = scalar_select %p267_p1, %s978_s21, %s269_s25  }
   0xc   : > { %p1087_p5 = por %p280_p2, %p279_p0  ;;  %p1091_p6 = por %p286_p4, %p285_p3 }
   0xd   : > { %p808_p7 = scmp.ge.s32.totalorder %s982_s22, 1  ;;  %p341_p8 = scmp.lt.s32.totalorder %s982_s22, 3 }
   0xf   : > { %p342_p9 = pnand %p808_p7, %p341_p8 }
  0x10   : > { %p379_p10 = scmp.lt.s32.totalorder (!%p342_p9), %s1070_s10, 1  ;;  %s1269_s0 = sld [smem:[#allocation6_spill]] (!%p342_p9) }
  0x11   : > { %345 = sbr.rel (%p342_p9) target bundleno = 688 (0x2b0), region = 64  ;;  %s377_s30 = sand.u32 (!%p342_p9), 1, %s974_s20  }
  0x12   : > { %s746_s14 = scalar_lea.hbm (!%p342_p9), %s1265_s11, %s1070_s10  ;;  %s378_s15 = scalar_lea.vmem (!%p342_p9), [#allocation3], %s377_s30 }
  0x13   : > { %s748_s16 = sshll.u32 (!%p342_p9), %s378_s15, 4  ;;  %s749_s16 = int_to_ptr.vmem [resolvable:$true] %s748_s16 }
  0x16   : > { %v391_v1 = vld [vmem:[%s1255_s1 + $0x18] sm:$0xff]  ;;  %v389_v2 = vld [vmem:[%s1255_s1 + $0x8] sm:$0xff]  ;;  %v984_v4 = vmov 0   ;;  %v386_v5 = vld [vmem:[%s1256_s2 + $0x10] sm:$0xff]  ;;  %v985_v7 = vmov 1   ;;  %s380_s17 = scalar_select %p379_p10, %s1070_s10, 1 }
  0x17   : > { %v387_v3 = vld [vmem:[%s1256_s2 + $0x18] sm:$0xff]  ;;  %880 = vset.pattern.permute.xlu2 %v984_v4  ;;  %878 = vset.pattern.permute.xlu1 %v984_v4  ;;  %v390_v6 = vld [vmem:[%s1255_s1 + $0x10] sm:$0xff]  ;;  %v385_v8 = vld [vmem:[%s1256_s2 + $0x8] sm:$0xff]  ;;  %vm498_vm0 = vcmask 261120   ;;  %s940_s10 = scalar_lea.hbm %s1265_s11, 2 }
  0x18   : > { %877 = vset.pattern.permute.xlu0 %v984_v4  ;;  %399 = vperm.xlu2 %880, %v389_v2   ;;  %v388_v9 = vld [vmem:[%s1255_s1] sm:$0xff]  ;;  %v476_v11 = vld [vmem:[%s1258_s4 + $0x10] sm:$0xff]  ;;  %v551_v12 = vld [vmem:[%s1260_s6 + $0x18] sm:$0xff]  ;;  %s809_s18 = sshll.u32 %s380_s17, 1  ;;  %s750_s17 = sshll.u32 %s746_s14, 4  ;;  %s751_s17 = int_to_ptr.hbm [resolvable:$true] %s750_s17 }
  0x19   : > { %409 = vperm.xlu0 %877, %v391_v1   ;;  %434 = vperm.xlu1 %878, %v387_v3   ;;  %v384_v10 = vld [vmem:[%s1256_s2] sm:$0xff]  ;;  %v549_v13 = vld [vmem:[%s1260_s6 + $0x8] sm:$0xff]  ;;  %v693_v16 = vld [vmem:[%s1263_s9 + $0x18] sm:$0xff]  ;;  %s382_s26 = scalar_lea.vmem %s1269_s0, %s809_s18  ;;  %s738_s18 = scalar_lea.sflag [#allocation4], %s377_s30 }
  0x1a   : > { %v622_v14 = vld [vmem:[%s1262_s8 + $0x8] sm:$0xff]  ;;  %v690_v15 = vld [vmem:[%s1263_s9] sm:$0xff]  ;;  %v477_v21 = vld [vmem:[%s1258_s4 + $0x18] sm:$0xff]  ;;  %s934_s23 = sshra.s32 %s751_s17, 4  ;;  %s935_s23 = int_to_ptr.hbm [resolvable:$true] %s934_s23 }
  0x1b   : > { %v383_v18 = vld [vmem:[%s382_s26] sm:$0x3]  ;;  %v475_v31 = vld [vmem:[%s1258_s4 + $0x8] sm:$0xff]  ;;  %v550_v34 = vld [vmem:[%s1260_s6 + $0x10] sm:$0xff]  ;;  %s936_s25 = scalar_lea.hbm %s935_s23, 1  ;;  %p941_p0 = scmp.lt.s32.totalorder %s935_s23, %s1265_s11 }
  0x1c   : > { %v412_v22 = vperm.slane %v383_v18, 0  ;;  %v457_v24 = vperm.slane %v383_v18, 1  ;;  %v474_v26 = vld [vmem:[%s1258_s4] sm:$0xff]  ;;  %v623_v48 = vld [vmem:[%s1262_s8 + $0x10] sm:$0xff]  ;;  %v624_v57 = vld [vmem:[%s1262_s8 + $0x18] sm:$0xff]  ;;  %p937_p11 = scmp.ne.s32.totalorder %s935_s23, %s936_s25  ;;  %p942_p1 = scmp.lt.s32.totalorder %s940_s10, %s936_s25 }
  0x1d   : > { %v548_v40 = vld [vmem:[%s1260_s6] sm:$0xff]  ;;  %v691_v58 = vld [vmem:[%s1263_s9 + $0x8] sm:$0xff]  ;;  %v692_v63 = vld [vmem:[%s1263_s9 + $0x10] sm:$0xff] }
  0x1e   : > { %v621_v43 = vld [vmem:[%s1262_s8] sm:$0xff]  ;;  %v471_v60 = vld [vmem:[%s1257_s3 + $0x8] sm:$0xff]  ;;  %p938_p12 = pnand %p937_p11, %p1087_p5  ;;  %p943_p2 = por %p942_p1, %p941_p0 }
  0x1f   : > { %v470_v61 = vld [vmem:[%s1257_s3] sm:$0xff] }
  0x20   : > { %429 = vperm.xlu2 %880, %v386_v5   ;;  %v727_v0 = vld [vmem:[#allocation2] sm:$0x1]  ;;  %p939_p13 = pneg %p938_p12 }
  0x21   : > { %404 = vperm.xlu0 %877, %v390_v6   ;;  %879 = vset.pattern.permute.xlu1 %v985_v7  ;;  %v544_v18 = vld [vmem:[%s1259_s5] sm:$0xff] }
  0x22   : > { %454 = vperm.xlu1 %879, %v391_v1   ;;  %v472_v1 = vld [vmem:[%s1257_s3 + $0x10] sm:$0xff]  ;;  %p944_p3 = pnand %p943_p2, %p939_p13 }
  0x28   : > { %424 = vperm.xlu2 %880, %v385_v8  }
  0x29   : > { %881 = vset.pattern.permute.xlu0 %v985_v7 }
  0x2a   : > { %450 = vperm.xlu0 %881, %v390_v6   ;;  %882 = vset.pattern.permute.xlu1 %v984_v4 }
  0x2b   : > { %394 = vperm.xlu1 %882, %v388_v9  }
  0x30   : > { %419 = vperm.xlu2 %880, %v384_v10  }
  0x32   : > { %442 = vperm.xlu0 %881, %v388_v9  }
  0x33   : > { %883 = vset.pattern.permute.xlu1 %v985_v7 }
  0x34   : > { %446 = vperm.xlu1 %883, %v389_v2   ;;  %v473_v2 = vld [vmem:[%s1257_s3 + $0x18] sm:$0xff] }
  0x38   : > { %490 = vperm.xlu2 %880, %v476_v11  }
  0x3a   : > { %885 = vset.pattern.permute.xlu0 %v984_v4 }
  0x3b   : > { %485 = vperm.xlu0 %885, %v475_v31  }
  0x3c   : > { %884 = vset.pattern.permute.xlu1 %v984_v4 }
  0x3d   : > { %495 = vperm.xlu1 %884, %v477_v21   ;;  %v546_v21 = vld [vmem:[%s1259_s5 + $0x10] sm:$0xff] }
  0x40   : > { %569 = vperm.xlu2 %880, %v551_v12  }
  0x43   : > { %554 = vperm.xlu0 %885, %v548_v40  }
  0x45   : > { %480 = vperm.xlu1 %884, %v474_v26  }
  0x48   : > { %559 = vperm.xlu2 %880, %v549_v13  }
  0x4b   : > { %637 = vperm.xlu0 %885, %v623_v48  }
  0x4d   : > { %564 = vperm.xlu1 %884, %v550_v34  }
  0x50   : > { %632 = vperm.xlu2 %880, %v622_v14  }
  0x53   : > { %701 = vperm.xlu0 %885, %v691_v58  }
  0x55   : > { %627 = vperm.xlu1 %884, %v621_v43  }
  0x58   : > { %696 = vperm.xlu2 %880, %v690_v15  }
  0x5b   : > { %730 = vperm.xlu0 %885, %v727_v0  }
  0x5d   : > { %642 = vperm.xlu1 %884, %v624_v57  }
  0x60   : > { %711 = vperm.xlu2 %880, %v693_v16  }
  0x65   : > { %706 = vperm.xlu1 %884, %v692_v63  }
  0x72   : > { %v400_v17 = vpop.permute.xlu2 %399 }
  0x73   : > { %v414_v44 = vmul.f32 %v412_v22, %v400_v17 }
  0x7a   : > { %v430_v25 = vpop.permute.xlu2 %429 }
  0x82   : > { %v425_v35 = vpop.permute.xlu2 %424 }
  0x83   : > { %v438_v52 = vadd.f32 %v425_v35, %v414_v44 }
  0x8a   : > { %v420_v49 = vpop.permute.xlu2 %419 }
  0x8b   : > { %v410_v19 = vpop.permute.xlu0 %409  ;;  %v435_v20 = vpop.permute.xlu1 %434 }
  0x8c   : > { %v416_v23 = vmul.f32 %v412_v22, %v410_v19  ;;  %v545_v19 = vld [vmem:[%s1259_s5 + $0x8] sm:$0xff] }
  0x8e   : > { %v440_v29 = vadd.f32 %v435_v20, %v416_v23 }
  0x92   : > { %v491_v6 = vpop.permute.xlu2 %490 }
  0x93   : > { %v405_v27 = vpop.permute.xlu0 %404 }
  0x94   : > { %v455_v28 = vpop.permute.xlu1 %454  ;;  %v415_v33 = vmul.f32 %v412_v22, %v405_v27 }
  0x95   : > { %v461_v30 = vmul.f32 %v457_v24, %v455_v28 }
  0x96   : > { %v439_v37 = vadd.f32 %v430_v25, %v415_v33 }
  0x97   : > { %v465_v32 = vadd.f32 %v461_v30, %v440_v29 }
  0x99   : > { %886 = vtanh.f32 %v465_v32 }
  0x9c   : > { %v451_v36 = vpop.permute.xlu0 %450 }
  0x9d   : > { %v460_v38 = vmul.f32 %v457_v24, %v451_v36  ;;  %v395_v39 = vpop.permute.xlu1 %394 }
  0x9e   : > { %v413_v45 = vmul.f32 %v412_v22, %v395_v39  ;;  %v547_v22 = vld [vmem:[%s1259_s5 + $0x18] sm:$0xff]  ;;  %v618_v39 = vld [vmem:[%s1261_s7 + $0x8] sm:$0xff] }
  0x9f   : > { %v887_v41 = vpop.eup %886  ;;  %v464_v42 = vadd.f32 %v460_v38, %v439_v37  ;;  %v617_v38 = vld [vmem:[%s1261_s7] sm:$0xff] }
  0xa0   : > { %523 = vmatpush.msra.mxu0 %v887_v41  ;;  %824 = vmatpush.msra.mxu3 %v887_v41  ;;  %v437_v53 = vadd.f32 %v420_v49, %v413_v45  ;;  %v619_v41 = vld [vmem:[%s1261_s7 + $0x10] sm:$0xff] }
  0xa1   : > { %888 = vtanh.f32 %v464_v42  ;;  %v620_v42 = vld [vmem:[%s1261_s7 + $0x18] sm:$0xff] }
  0xa4   : > { %v443_v46 = vpop.permute.xlu0 %442 }
  0xa5   : > { %v458_v47 = vmul.f32 %v457_v24, %v443_v46 }
  0xa6   : > { %v447_v50 = vpop.permute.xlu1 %446 }
  0xa7   : > { %v889_v51 = vpop.eup %888  ;;  %v459_v54 = vmul.f32 %v457_v24, %v447_v50  ;;  %v462_v55 = vadd.f32 %v458_v47, %v437_v53  ;;  %v570_v24 = vpop.permute.xlu2 %569 }
  0xa8   : > { %524 = vmatpush.msra.mxu0 %v889_v51  ;;  %825 = vmatpush.msra.mxu3 %v889_v51 }
  0xa9   : > { %v463_v56 = vadd.f32 %v459_v54, %v438_v52 }
  0xab   : > { %890 = vtanh.f32 %v463_v56 }
  0xac   : > { %892 = vtanh.f32 %v462_v55 }
  0xad   : > { %v486_v10 = vpop.permute.xlu0 %485 }
  0xaf   : > { %v496_v5 = vpop.permute.xlu1 %495  ;;  %v560_v30 = vpop.permute.xlu2 %559 }
  0xb1   : > { %v891_v59 = vpop.eup %890 }
  0xb2   : > { %525 = vmatpush.msra.mxu0 %v891_v59  ;;  %826 = vmatpush.msra.mxu3 %v891_v59  ;;  %v893_v62 = vpop.eup %892 }
  0xb4   : > { %526 = vmatpush.msra.mxu0 %v893_v62  ;;  %827 = vmatpush.msra.mxu3 %v893_v62 }
  0xb5   : > { %811 = vmatmul.msk.f32.vlgmr.msra.gmra.mxu3 %vm498_vm0, %v471_v60  ;;  %810 = vmatmul.msk.f32.vlgmr.msra.gmra.mxu0 %vm498_vm0, %v470_v61  ;;  %v555_v33 = vpop.permute.xlu0 %554 }
  0xb7   : > { %v481_v13 = vpop.permute.xlu1 %480  ;;  %v633_v45 = vpop.permute.xlu2 %632 }
  0xbd   : > { %812 = vmatmul.msk.f32.gmra.mxu3 %vm498_vm0, %v472_v1  ;;  %v638_v48 = vpop.permute.xlu0 %637 }
  0xbf   : > { %v565_v26 = vpop.permute.xlu1 %564  ;;  %v697_v53 = vpop.permute.xlu2 %696 }
  0xc5   : > { %813 = vmatmul.msk.f32.gmra.mxu3 %vm498_vm0, %v473_v2  ;;  %v702_v59 = vpop.permute.xlu0 %701 }
  0xc7   : > { %v628_v44 = vpop.permute.xlu1 %627  ;;  %v712_v2 = vpop.permute.xlu2 %711 }
  0xcf   : > { %v643_v52 = vpop.permute.xlu1 %642 }
  0xd7   : > { %v707_v61 = vpop.permute.xlu1 %706 }
 0x132   : > { %v528_v11 = vpop.f32.mrf.mxu0 }
 0x133   : > { %v529_v14 = vadd.f32 %v528_v11, %v481_v13 }
 0x138   : > { %v531_v3 = vpop.f32.mrf.mxu3 }
 0x139   : > { %v532_v12 = vadd.f32 %v531_v3, %v486_v10  ;;  %v731_v10 = vpop.permute.xlu0 %730 }
 0x140   : > { %v534_v4 = vpop.f32.mrf.mxu3 }
 0x141   : > { %v535_v8 = vadd.f32 %v534_v4, %v491_v6 }
 0x148   : > { %v537_v7 = vpop.f32.mrf.mxu3 }
 0x149   : > { %v538_v9 = vadd.f32 %v537_v7, %v496_v5 }
 0x14b   : > { %894 = vtanh.f32 %v538_v9 }
 0x14c   : > { %896 = vtanh.f32 %v535_v8 }
 0x14d   : > { %898 = vtanh.f32 %v532_v12  ;;  %v733_v12 = vperm.slane %v731_v10, 0 }
 0x14e   : > { %900 = vtanh.f32 %v529_v14 }
 0x151   : > { %v895_v15 = vpop.eup %894 }
 0x152   : > { %596 = vmatpush.msrb.mxu0 %v895_v15  ;;  %828 = vmatpush.msra.mxu1 %v895_v15  ;;  %v897_v16 = vpop.eup %896 }
 0x153   : > { %v899_v17 = vpop.eup %898 }
 0x154   : > { %597 = vmatpush.msrb.mxu0 %v897_v16  ;;  %829 = vmatpush.msra.mxu1 %v897_v16  ;;  %v901_v20 = vpop.eup %900 }
 0x156   : > { %598 = vmatpush.msrb.mxu0 %v899_v17  ;;  %830 = vmatpush.msra.mxu1 %v899_v17 }
 0x158   : > { %599 = vmatpush.msrb.mxu0 %v901_v20  ;;  %831 = vmatpush.msra.mxu1 %v901_v20 }
 0x159   : > { %814 = vmatmul.msk.f32.vlgmr.msrb.gmra.mxu0 %vm498_vm0, %v544_v18  ;;  %815 = vmatmul.msk.f32.vlgmr.msra.gmra.mxu1 %vm498_vm0, %v545_v19 }
 0x161   : > { %816 = vmatmul.msk.f32.gmra.mxu1 %vm498_vm0, %v546_v21 }
 0x169   : > { %817 = vmatmul.msk.f32.gmra.mxu1 %vm498_vm0, %v547_v22 }
 0x1d6   : > { %v604_v23 = vpop.f32.mrf.mxu1  ;;  %v601_v31 = vpop.f32.mrf.mxu0 }
 0x1d7   : > { %v605_v32 = vadd.f32 %v604_v23, %v560_v30  ;;  %v602_v34 = vadd.f32 %v601_v31, %v555_v33 }
 0x1de   : > { %v607_v25 = vpop.f32.mrf.mxu1 }
 0x1df   : > { %v608_v28 = vadd.f32 %v607_v25, %v565_v26 }
 0x1e6   : > { %v610_v27 = vpop.f32.mrf.mxu1 }
 0x1e7   : > { %v611_v29 = vadd.f32 %v610_v27, %v570_v24 }
 0x1e9   : > { %902 = vtanh.f32 %v611_v29 }
 0x1ea   : > { %904 = vtanh.f32 %v608_v28 }
 0x1eb   : > { %906 = vtanh.f32 %v605_v32 }
 0x1ec   : > { %908 = vtanh.f32 %v602_v34 }
 0x1ef   : > { %v903_v35 = vpop.eup %902 }
 0x1f0   : > { %669 = vmatpush.msra.mxu0 %v903_v35  ;;  %832 = vmatpush.msra.mxu2 %v903_v35  ;;  %v905_v36 = vpop.eup %904 }
 0x1f1   : > { %v907_v37 = vpop.eup %906 }
 0x1f2   : > { %670 = vmatpush.msra.mxu0 %v905_v36  ;;  %833 = vmatpush.msra.mxu2 %v905_v36  ;;  %v909_v40 = vpop.eup %908 }
 0x1f4   : > { %671 = vmatpush.msra.mxu0 %v907_v37  ;;  %834 = vmatpush.msra.mxu2 %v907_v37 }
 0x1f6   : > { %672 = vmatpush.msra.mxu0 %v909_v40  ;;  %835 = vmatpush.msra.mxu2 %v909_v40 }
 0x1f7   : > { %818 = vmatmul.msk.f32.vlgmr.msra.gmra.mxu0 %vm498_vm0, %v617_v38  ;;  %819 = vmatmul.msk.f32.vlgmr.msra.gmra.mxu2 %vm498_vm0, %v618_v39 }
 0x1ff   : > { %820 = vmatmul.msk.f32.gmra.mxu2 %vm498_vm0, %v619_v41 }
 0x207   : > { %821 = vmatmul.msk.f32.gmra.mxu2 %vm498_vm0, %v620_v42 }
 0x274   : > { %v674_v46 = vpop.f32.mrf.mxu0 }
 0x275   : > { %v675_v49 = vadd.f32 %v674_v46, %v628_v44 }
 0x27a   : > { %v677_v43 = vpop.f32.mrf.mxu2 }
 0x27b   : > { %v678_v47 = vadd.f32 %v677_v43, %v633_v45 }
 0x27d   : > { %910 = vtanh.f32 %v678_v47 }
 0x27e   : > { %912 = vtanh.f32 %v675_v49 }
 0x282   : > { %v680_v50 = vpop.f32.mrf.mxu2 }
 0x283   : > { %v681_v51 = vadd.f32 %v680_v50, %v638_v48  ;;  %v911_v55 = vpop.eup %910 }
 0x284   : > { %v913_v57 = vpop.eup %912  ;;  %v715_v60 = vmul.f32 %v911_v55, %v702_v59 }
 0x285   : > { %914 = vtanh.f32 %v681_v51  ;;  %v714_v62 = vmul.f32 %v913_v57, %v697_v53 }
 0x287   : > { %v718_v0 = vadd.f32 %v715_v60, %v714_v62 }
 0x28a   : > { %v683_v54 = vpop.f32.mrf.mxu2 }
 0x28b   : > { %v684_v56 = vadd.f32 %v683_v54, %v643_v52  ;;  %v915_v58 = vpop.eup %914 }
 0x28c   : > { %v716_v63 = vmul.f32 %v915_v58, %v707_v61 }
 0x28d   : > { %916 = vtanh.f32 %v684_v56 }
 0x28e   : > { %v719_v3 = vadd.f32 %v718_v0, %v716_v63 }
 0x293   : > { %v917_v1 = vpop.eup %916 }
 0x294   : > { %v717_v4 = vmul.f32 %v917_v1, %v712_v2 }
 0x296   : > { %v720_v5 = vadd.f32 %v719_v3, %v717_v4 }
 0x298   : > { %v721_v6 = vrot.slane %v720_v5, 4 }
 0x29a   : > { %v722_v7 = vadd.f32 %v721_v6, %v720_v5 }
 0x29c   : > { %v723_v8 = vrot.slane %v722_v7, 2 }
 0x29e   : > { %v724_v9 = vadd.f32 %v723_v8, %v722_v7 }
 0x2a0   : > { %v725_v11 = vrot.slane %v724_v9, 1 }
 0x2a2   : > { %v726_v13 = vadd.f32 %v725_v11, %v724_v9 }
 0x2a4   : > { %v734_v14 = vadd.f32 %v733_v12, %v726_v13 }
 0x2a6   : > { %918 = vtanh.f32 %v734_v14 }
 0x2ac   : > { %v919_v15 = vpop.eup %918 }
 0x2ad   : > { %736 = vst [vmem:[%s378_s15] sm:$0x1] %v919_v15 }
 0x2ae   : > { %947 = shalt.err (!%p944_p3)
}
 0x2af   : > { %836 = dma.vmem_to_hbm [thread:$0]  (%p1087_p5), %s749_s16, 16, %s751_s17, %s738_s18  }
 0x2b0 PF: > { %p842_p4 = scmp.ge.s32.totalorder %s982_s22, 2  ;;  %s762_s30 = sand.u32 1, %s970_s19  }
 0x2b1   : > { %s763_s0 = scalar_lea.sflag [#allocation4], %s762_s30 }
 0x2b2   : > { %p839_p7 = pnand %p842_p4, %p1091_p6 }
 0x2b4   : > { %p840_p8 = pneg %p839_p7 }
 0x2b6   : > { %965 = dma.done.wait (%p840_p8), %s763_s0, 16  }
 0x2b7   : > { %967 = vsyncadd (%p840_p8), %s763_s0, 4294967280  ;;  %p23_p9 = scmp.ge.s32.totalorder %s1074_s24, 4   ;;  %s1270_s19 = smov %s974_s20 }
 0x2b8   : > { %s1271_s20 = smov %s978_s21  ;;  %s1272_s21 = smov %s1085_s27 }
 0x2b9   : > { %s1273_s22 = smov %s1074_s24  ;;  %25 = sbr.rel (!%p23_p9) target bundleno = 6 (0x6), region = 99 }
 0x2be   :  { %768 = vsyncpa [#allocation4], 1 }
 0x2bf   :  { %770 = vsyncpa [#allocation4 + $0x1], 1 }

</bundles_post_ra>
